<compile_context>
chip_gen: v7x
topology: tpu7x:2x2x1
jax: 0.10.0
libtpu: 0.0.40
codegen_flags: <defaults>
</compile_context>

<pallas_src>
import functools

import numpy as np
import jax
import jax.numpy as jnp
from jax import lax
from jax.experimental import pallas as pl
from jax.experimental.pallas import tpu as pltpu


def _pool_gemm_kernel(inp_ref, w_ref, out_ref):
    # One fat MXU matmul per grid step: (tm, K) @ (K, 2*dim) -> (tm, 2*dim).
    out_ref[...] = jnp.dot(
        inp_ref[...], w_ref[...], preferred_element_type=jnp.float32
    ).astype(out_ref.dtype)


def fold_pool_params(wdw_pt, bdw, wpw_pt, bpw, wcls_pt, bcls):
    """Fold all Pool parameters into a single GEMM weight.

    wdw_pt : (2*dim, 1, 3, 3)     depthwise Conv2d weight (groups=dim)
    bdw    : (2*dim,)             depthwise bias
    wpw_pt : (2*dim, 2*dim, 1, 1) pointwise Conv2d weight
    bpw    : (2*dim,)             pointwise bias
    wcls_pt: (2*dim, dim)         cls Linear weight
    bcls   : (2*dim,)             cls Linear bias

    Returns w_all of shape (10*dim + 2, 2*dim):
      rows [0, 9*dim)      : folded depthwise+pointwise weight (row k*dim + d)
      rows [9*dim, 10*dim) : cls Linear weight
      row  10*dim          : folded conv bias  (bdw @ wpw + bpw)
      row  10*dim + 1      : cls bias
    """
    C2 = wdw_pt.shape[0]
    dim = C2 // 2
    wdw = wdw_pt[:, 0].transpose(1, 2, 0).reshape(9, C2)   # (k=ky*3+kx, c_out)
    wpw = wpw_pt[:, :, 0, 0].T                             # (c_in, c_out)
    # Depthwise out-channel co reads in-channel co//2 (groups=dim, 2 out/group):
    # fold the per-group pair of depthwise channels straight into the 1x1 conv.
    wfold = (wdw[:, :, None] * wpw[None, :, :]).reshape(9, dim, 2, C2).sum(axis=2)
    bfold = bdw @ wpw + bpw
    wcls = wcls_pt.T                                       # (dim, 2*dim)
    w_all = jnp.concatenate(
        [wfold.reshape(9 * dim, C2), wcls, bfold[None, :], bcls[None, :]], axis=0)
    return w_all


def _choose_row_tile(m, bytes_per_row, weight_bytes,
                     budget_bytes=12 * 1024 * 1024):
    """Largest multiple-of-8 row tile whose double-buffered in+out blocks plus
    the (double-buffered) resident weight fit the VMEM budget."""
    avail = budget_bytes - 2 * weight_bytes
    avail = max(avail, 2 * 8 * bytes_per_row)          # always allow tm=8
    cap = avail // (2 * bytes_per_row)
    tm = int(min(cap, 1024, max(m, 8)))
    tm = max(8, (tm // 8) * 8)
    return tm


@functools.partial(jax.jit, static_argnames=("img_size",))
def pool_forward(x, w_all, img_size):
    """x: (B, 1 + img_size**2, dim) channels-last; w_all: folded (10*dim+2, 2*dim)."""
    B, n, dim = x.shape
    h = img_size
    assert n == 1 + h * h
    C2 = w_all.shape[-1]
    K9 = 9 * dim
    K = K9 + dim + 2
    assert w_all.shape[0] == K
    hp = (h + 1) // 2                 # Conv2d(k=3, stride=2, pad=1) output size
    hw = hp * hp
    rows_per_b = 1 + hw
    M = B * rows_per_b
    f = x.dtype

    # ---- row assembly (layout-only XLA glue, fused under jit) ---------------
    cls = x[:, :1, :]                                    # (B, 1, dim)
    tokens = x[:, 1:, :].reshape(B, h, h, dim)           # b (h w) c -> b h w c
    tok_pad = jnp.pad(tokens, ((0, 0), (1, 1), (1, 1), (0, 0)))
    # 9 strided taps of the 3x3 / stride-2 window, concatenated along channels.
    taps = jnp.stack([tok_pad[:, ky:ky + 2 * hp:2, kx:kx + 2 * hp:2, :]
                      for ky in range(3) for kx in range(3)], axis=3)
    taps = taps.reshape(B, hw, K9)                       # (B, hw, 9*dim)

    zeros = functools.partial(jnp.zeros, dtype=f)
    ones = functools.partial(jnp.ones, dtype=f)
    # token rows: [taps | 0_dim | 1 (conv-bias indicator) | 0]
    tok_rows = jnp.concatenate(
        [taps, zeros((B, hw, dim)), ones((B, hw, 1)), zeros((B, hw, 1))], axis=-1)
    # cls rows:   [0_9dim | cls | 0 | 1 (cls-bias indicator)]
    cls_rows = jnp.concatenate(
        [zeros((B, 1, K9)), cls, zeros((B, 1, 1)), ones((B, 1, 1))], axis=-1)
    # Row order == output row order: (b, 0)=cls, (b, 1+p)=token position p.
    inp = jnp.concatenate([cls_rows, tok_rows], axis=1).reshape(M, K)

    # ---- single fused GEMM on the MXU ---------------------------------------
    itemsize = jnp.dtype(f).itemsize
    bytes_per_row = (K + C2) * itemsize
    weight_bytes = K * C2 * itemsize
    tm = _choose_row_tile(M, bytes_per_row, weight_bytes)
    M_pad = pl.cdiv(M, tm) * tm
    if M_pad != M:                                       # static pad; sliced off below
        inp = jnp.pad(inp, ((0, M_pad - M), (0, 0)))

    out = pl.pallas_call(
        _pool_gemm_kernel,
        grid=(M_pad // tm,),
        in_specs=[
            pl.BlockSpec((tm, K), lambda i: (i, 0)),     # activation row block
            pl.BlockSpec((K, C2), lambda i: (0, 0)),     # resident fused weight
        ],
        out_specs=pl.BlockSpec((tm, C2), lambda i: (i, 0)),
        out_shape=jax.ShapeDtypeStruct((M_pad, C2), f),
        compiler_params=pltpu.CompilerParams(
            dimension_semantics=("parallel",)),
    )(inp, w_all)

    # Free (contiguous) reshape -- no trailing concatenate.
    return out[:M].reshape(B, rows_per_b, C2)


def pool_reference(x, wdw_pt, bdw, wpw_pt, bpw, wcls_pt, bcls, img_size, dim):
    """Pure-JAX (XLA conv) reference matching the PyTorch forward."""
    B = x.shape[0]
    h = img_size
    hp = (h + 1) // 2
    cls = jnp.einsum('bsd,nd->bsn', x[:, :1, :], wcls_pt,
                     precision=lax.Precision.HIGHEST) + bcls
    tokens = x[:, 1:, :].reshape(B, h, h, dim).transpose(0, 3, 1, 2)        # NCHW
    dw = lax.conv_general_dilated(
        tokens, wdw_pt, window_strides=(2, 2), padding=((1, 1), (1, 1)),
        dimension_numbers=('NCHW', 'OIHW', 'NCHW'),
        feature_group_count=dim,
        precision=lax.Precision.HIGHEST) + bdw.reshape(1, -1, 1, 1)
    pw = lax.conv_general_dilated(
        dw, wpw_pt, window_strides=(1, 1), padding='VALID',
        dimension_numbers=('NCHW', 'OIHW', 'NCHW'),
        precision=lax.Precision.HIGHEST) + bpw.reshape(1, -1, 1, 1)
    tok = pw.transpose(0, 2, 3, 1).reshape(B, hp * hp, 2 * dim)             # b c h w -> b (h w) c
    return jnp.concatenate([cls, tok], axis=1)


def _run_case(key, B, dim, img):
    C2 = 2 * dim
    ks = jax.random.split(key, 7)
    x = jax.random.normal(ks[0], (B, 1 + img * img, dim), jnp.float32)

    wdw_pt = jax.random.normal(ks[1], (C2, 1, 3, 3), jnp.float32) * 0.1   # depthwise Conv2d weight
    bdw = jax.random.normal(ks[2], (C2,), jnp.float32) * 0.1
    wpw_pt = jax.random.normal(ks[3], (C2, C2, 1, 1), jnp.float32) * 0.1  # 1x1 Conv2d weight
    bpw = jax.random.normal(ks[4], (C2,), jnp.float32) * 0.1
    wcls_pt = jax.random.normal(ks[5], (C2, dim), jnp.float32) * 0.1      # Linear weight
    bcls = jax.random.normal(ks[6], (C2,), jnp.float32) * 0.1

    # One-time offline weight folding (depthwise + pointwise + cls + biases).
    w_all = fold_pool_params(wdw_pt, bdw, wpw_pt, bpw, wcls_pt, bcls)

    out = pool_forward(x, w_all, img_size=img)
    jax.block_until_ready(out)

    ref = pool_reference(x, wdw_pt, bdw, wpw_pt, bpw, wcls_pt, bcls, img, dim)
    # Tolerance covers possible multi-pass bf16 MXU handling of f32 dots/convs
    # on older generations; true f32 accumulation matches to ~1e-5.
    np.testing.assert_allclose(np.asarray(out), np.asarray(ref), rtol=1e-2, atol=1e-2)
    assert out.shape == (B, 1 + ((img + 1) // 2) ** 2, C2)


if __name__ == "__main__":
    key = jax.random.PRNGKey(0)
    k1, k2 = jax.random.split(key)
    # Even token grid: seq = 1 + 8*8 = 65, dim = 64 so 2*dim = 128 (lane-dense).
    _run_case(k1, B=8, dim=64, img=8)
    # Odd token grid (PiT-style): seq = 1 + 7*7 = 50, conv output 4x4.
    _run_case(k2, B=4, dim=64, img=7)
    print("KERNEL_OK")
</pallas_src>

<mosaic_0001>
module attributes {stable_mosaic.version = 11 : i64} {
  func.func @_pool_gemm_kernel(%arg0: i32, %arg1: memref<136x642xf32, #tpu.memory_space<vmem>>, %arg2: memref<642x128xf32, #tpu.memory_space<vmem>>, %arg3: memref<136x128xf32, #tpu.memory_space<vmem>>) attributes {dimension_semantics = [#tpu.dimension_semantics<parallel>], iteration_bounds = array<i64: 1>, scalar_prefetch = 0 : i64, scratch_operands = 0 : i64, tpu.core_type = #tpu.core_type<tc>, window_params = [{transform_indices = @transform_0, window_bounds = array<i64: 136, 642>}, {pipeline_mode = #tpu.pipeline_mode<synchronous>, transform_indices = @transform_1, window_bounds = array<i64: 642, 128>}, {transform_indices = @transform_2, window_bounds = array<i64: 136, 128>}]} {
    %c0 = arith.constant 0 : index
    %c0_0 = arith.constant 0 : index
    %0 = vector.load %arg1[%c0, %c0_0] : memref<136x642xf32, #tpu.memory_space<vmem>>, vector<136x642xf32>
    %c0_1 = arith.constant 0 : index
    %c0_2 = arith.constant 0 : index
    %1 = vector.load %arg2[%c0_1, %c0_2] : memref<642x128xf32, #tpu.memory_space<vmem>>, vector<642x128xf32>
    %cst = arith.constant dense<0.000000e+00> : vector<136x128xf32>
    %2 = tpu.matmul %0, %1, %cst {dimension_numbers = #tpu.dot_dimension_numbers<[1], [0], [0], [1], [0, 0, 1, 1], [], []>} : vector<136x642xf32>, vector<642x128xf32>, vector<136x128xf32> -> vector<136x128xf32>
    %c0_3 = arith.constant 0 : index
    %c0_4 = arith.constant 0 : index
    %3 = vector.load %arg3[%c0_3, %c0_4] : memref<136x128xf32, #tpu.memory_space<vmem>>, vector<136x128xf32>
    tpu.vector_store %arg3[%c0_3, %c0_4], %2 {strides = array<i32>} : memref<136x128xf32, #tpu.memory_space<vmem>>, vector<136x128xf32>,
    return
  }
  func.func @transform_0(%arg0: i32) -> (i32, i32) {
    %c0_i32 = arith.constant 0 : i32
    %c0_i32_0 = arith.constant 0 : i32
    return %arg0, %c0_i32 : i32, i32
  }
  func.func @transform_1(%arg0: i32) -> (i32, i32) {
    %c0_i32 = arith.constant 0 : i32
    %c0_i32_0 = arith.constant 0 : i32
    %c0_i32_1 = arith.constant 0 : i32
    return %c0_i32, %c0_i32_0 : i32, i32
  }
  func.func @transform_2(%arg0: i32) -> (i32, i32) {
    %c0_i32 = arith.constant 0 : i32
    %c0_i32_0 = arith.constant 0 : i32
    return %arg0, %c0_i32 : i32, i32
  }
}

</mosaic_0001>

<bundles_post_ra>
// kernel: pool_forward.1
= control target key start
LH: loop header
LB: loop body
LE: loop exit
PB: predicated region body
PF: predicated region fallthrough
CT: control target
= control target key end

     0   :  { %v944_v0 = vmov 0.0|0.0   ;;  %vm246_vm0 = vcmask 1041408   ;;  %vm194_vm1 = vcmask 15360   ;;  %s1698_s1 = inlined_call_operand.vmem [shape: f32[642,128], index: 1, kind: input, shape index: {}]   ;;  %s1699_s0 = inlined_call_operand.vmem [shape: f32[136,642], index: 0, kind: input, shape index: {}]   ;;  %s1700_s2 = inlined_call_operand.vmem [shape: f32[136,128], index: 2, kind: output, shape index: {}]  }
   0x1   :  { %739 = vmatprep.subr.bf16.mxu1 %v944_v0  ;;  %787 = vmatprep.subr.bf16.mxu0 %v944_v0  ;;  %v113_v1 = vld [vmem:[%s1698_s1] sm:$0xff]  ;;  %v114_v2 = vld [vmem:[%s1698_s1 + $0x8] sm:$0xff]  ;;  %v115_v6 = vld [vmem:[%s1698_s1 + $0x10] sm:$0xff] }
   0x2   :  { %v145_v3 = vld [vmem:[%s1698_s1 + $0x100] sm:$0xff]  ;;  %v740_v4 = vpack.c.bf16 %v114_v2, %v113_v1  ;;  %v146_v5 = vld [vmem:[%s1698_s1 + $0x108] sm:$0xff]  ;;  %v116_v7 = vld [vmem:[%s1698_s1 + $0x18] sm:$0xff] }
   0x3   :  { %v981_v8 = vpack.c.bf16 %v146_v5, %v145_v3  ;;  %v147_v9 = vld [vmem:[%s1698_s1 + $0x110] sm:$0xff]  ;;  %v148_v10 = vld [vmem:[%s1698_s1 + $0x118] sm:$0xff]  ;;  %v743_v11 = vpack.c.bf16 %v116_v7, %v115_v6  ;;  %v117_v13 = vld [vmem:[%s1698_s1 + $0x20] sm:$0xff] }
   0x4   :  { %741 = vmatpush1.bf16.msra.mxu1 %v740_v4  ;;  %v991_v12 = vpack.c.bf16 %v148_v10, %v147_v9  ;;  %v118_v14 = vld [vmem:[%s1698_s1 + $0x28] sm:$0xff]  ;;  %v149_v15 = vld [vmem:[%s1698_s1 + $0x120] sm:$0xff]  ;;  %v119_v19 = vld [vmem:[%s1698_s1 + $0x30] sm:$0xff] }
   0x5   :  { %789 = vmatpush1.bf16.msra.mxu0 %v981_v8  ;;  %742 = vmatprep.subr.bf16.mxu1 %v944_v0  ;;  %v150_v16 = vld [vmem:[%s1698_s1 + $0x128] sm:$0xff]  ;;  %v746_v17 = vpack.c.bf16 %v118_v14, %v117_v13  ;;  %v120_v20 = vld [vmem:[%s1698_s1 + $0x38] sm:$0xff]  ;;  %v151_v21 = vld [vmem:[%s1698_s1 + $0x130] sm:$0xff] }
   0x6   :  { %790 = vmatprep.subr.bf16.mxu0 %v944_v0  ;;  %v1008_v18 = vpack.c.bf16 %v150_v16, %v149_v15  ;;  %v152_v22 = vld [vmem:[%s1698_s1 + $0x138] sm:$0xff]  ;;  %v749_v23 = vpack.c.bf16 %v120_v20, %v119_v19  ;;  %v121_v25 = vld [vmem:[%s1698_s1 + $0x40] sm:$0xff]  ;;  %v122_v26 = vld [vmem:[%s1698_s1 + $0x48] sm:$0xff] }
   0x7   :  { %v1025_v24 = vpack.c.bf16 %v152_v22, %v151_v21  ;;  %v153_v27 = vld [vmem:[%s1698_s1 + $0x140] sm:$0xff]  ;;  %v154_v28 = vld [vmem:[%s1698_s1 + $0x148] sm:$0xff]  ;;  %v752_v29 = vpack.c.bf16 %v122_v26, %v121_v25  ;;  %v123_v31 = vld [vmem:[%s1698_s1 + $0x50] sm:$0xff] }
   0x8   :  { %744 = vmatpush1.bf16.msra.mxu1 %v743_v11  ;;  %v1042_v30 = vpack.c.bf16 %v154_v28, %v153_v27  ;;  %v124_v32 = vld [vmem:[%s1698_s1 + $0x58] sm:$0xff]  ;;  %v155_v33 = vld [vmem:[%s1698_s1 + $0x150] sm:$0xff]  ;;  %v125_v37 = vld [vmem:[%s1698_s1 + $0x60] sm:$0xff] }
   0x9   :  { %792 = vmatpush1.bf16.msra.mxu0 %v991_v12  ;;  %745 = vmatprep.subr.bf16.mxu1 %v944_v0  ;;  %v156_v34 = vld [vmem:[%s1698_s1 + $0x158] sm:$0xff]  ;;  %v755_v35 = vpack.c.bf16 %v124_v32, %v123_v31  ;;  %v126_v38 = vld [vmem:[%s1698_s1 + $0x68] sm:$0xff]  ;;  %v157_v39 = vld [vmem:[%s1698_s1 + $0x160] sm:$0xff] }
   0xa   :  { %793 = vmatprep.subr.bf16.mxu0 %v944_v0  ;;  %v1059_v36 = vpack.c.bf16 %v156_v34, %v155_v33  ;;  %v158_v40 = vld [vmem:[%s1698_s1 + $0x168] sm:$0xff]  ;;  %v14_v42 = vld [vmem:[%s1699_s0 + $0x18] sm:$0xff]  ;;  %v758_v43 = vpack.c.bf16 %v126_v38, %v125_v37  ;;  %v127_v45 = vld [vmem:[%s1698_s1 + $0x70] sm:$0xff] }
   0xb   :  { %v12_v41 = vld [vmem:[%s1699_s0 + $0x8] sm:$0xff]  ;;  %464 = vmatprep.mubr.f32.mxu0 %v14_v42  ;;  %v1082_v44 = vpack.c.bf16 %v158_v40, %v157_v39  ;;  %v128_v46 = vld [vmem:[%s1698_s1 + $0x78] sm:$0xff]  ;;  %v159_v47 = vld [vmem:[%s1698_s1 + $0x170] sm:$0xff] }
   0xc   :  { %747 = vmatpush1.bf16.msra.mxu1 %v746_v17  ;;  %314 = vmatprep.mubr.f32.mxu1 %v12_v41  ;;  %v160_v48 = vld [vmem:[%s1698_s1 + $0x178] sm:$0xff]  ;;  %v761_v49 = vpack.c.bf16 %v128_v46, %v127_v45  ;;  %v129_v51 = vld [vmem:[%s1698_s1 + $0x80] sm:$0xff]  ;;  %v130_v52 = vld [vmem:[%s1698_s1 + $0x88] sm:$0xff] }
   0xd   :  { %795 = vmatpush1.bf16.msra.mxu0 %v1008_v18  ;;  %748 = vmatprep.subr.bf16.mxu1 %v944_v0  ;;  %v1099_v50 = vpack.c.bf16 %v160_v48, %v159_v47  ;;  %v161_v53 = vld [vmem:[%s1698_s1 + $0x180] sm:$0xff]  ;;  %v162_v54 = vld [vmem:[%s1698_s1 + $0x188] sm:$0xff]  ;;  %v764_v55 = vpack.c.bf16 %v130_v52, %v129_v51  ;;  %v131_v57 = vld [vmem:[%s1698_s1 + $0x90] sm:$0xff] }
   0xe   :  { %796 = vmatprep.subr.bf16.mxu0 %v944_v0  ;;  %v1116_v56 = vpack.c.bf16 %v162_v54, %v161_v53  ;;  %v132_v58 = vld [vmem:[%s1698_s1 + $0x98] sm:$0xff]  ;;  %v163_v59 = vld [vmem:[%s1698_s1 + $0x190] sm:$0xff]  ;;  %v133_v63 = vld [vmem:[%s1698_s1 + $0xa0] sm:$0xff] }
   0xf   :  { %v164_v60 = vld [vmem:[%s1698_s1 + $0x198] sm:$0xff]  ;;  %v767_v61 = vpack.c.bf16 %v132_v58, %v131_v57  ;;  %v134_v1 = vld [vmem:[%s1698_s1 + $0xa8] sm:$0xff]  ;;  %v165_v2 = vld [vmem:[%s1698_s1 + $0x1a0] sm:$0xff] }
  0x10   :  { %750 = vmatpush1.bf16.msra.mxu1 %v749_v23  ;;  %v1133_v62 = vpack.c.bf16 %v164_v60, %v163_v59  ;;  %v166_v3 = vld [vmem:[%s1698_s1 + $0x1a8] sm:$0xff]  ;;  %v770_v4 = vpack.c.bf16 %v134_v1, %v133_v63  ;;  %v135_v6 = vld [vmem:[%s1698_s1 + $0xb0] sm:$0xff]  ;;  %v136_v7 = vld [vmem:[%s1698_s1 + $0xb8] sm:$0xff] }
  0x11   :  { %798 = vmatpush1.bf16.msra.mxu0 %v1025_v24  ;;  %751 = vmatprep.subr.bf16.mxu1 %v944_v0  ;;  %v1150_v5 = vpack.c.bf16 %v166_v3, %v165_v2  ;;  %v167_v9 = vld [vmem:[%s1698_s1 + $0x1b0] sm:$0xff]  ;;  %v168_v10 = vld [vmem:[%s1698_s1 + $0x1b8] sm:$0xff]  ;;  %v773_v11 = vpack.c.bf16 %v136_v7, %v135_v6  ;;  %v137_v14 = vld [vmem:[%s1698_s1 + $0xc0] sm:$0xff] }
  0x12   :  { %799 = vmatprep.subr.bf16.mxu0 %v944_v0  ;;  %v1167_v13 = vpack.c.bf16 %v168_v10, %v167_v9  ;;  %v138_v15 = vld [vmem:[%s1698_s1 + $0xc8] sm:$0xff]  ;;  %v169_v16 = vld [vmem:[%s1698_s1 + $0x1c0] sm:$0xff]  ;;  %v139_v21 = vld [vmem:[%s1698_s1 + $0xd0] sm:$0xff] }
  0x13   :  { %v170_v17 = vld [vmem:[%s1698_s1 + $0x1c8] sm:$0xff]  ;;  %v776_v19 = vpack.c.bf16 %v138_v15, %v137_v14  ;;  %v140_v22 = vld [vmem:[%s1698_s1 + $0xd8] sm:$0xff]  ;;  %v171_v23 = vld [vmem:[%s1698_s1 + $0x1d0] sm:$0xff] }
  0x14   :  { %753 = vmatpush1.bf16.msra.mxu1 %v752_v29  ;;  %v1184_v20 = vpack.c.bf16 %v170_v17, %v169_v16  ;;  %v172_v25 = vld [vmem:[%s1698_s1 + $0x1d8] sm:$0xff]  ;;  %v779_v26 = vpack.c.bf16 %v140_v22, %v139_v21  ;;  %v141_v28 = vld [vmem:[%s1698_s1 + $0xe0] sm:$0xff]  ;;  %v142_v29 = vld [vmem:[%s1698_s1 + $0xe8] sm:$0xff] }
  0x15   :  { %801 = vmatpush1.bf16.msra.mxu0 %v1042_v30  ;;  %754 = vmatprep.subr.bf16.mxu1 %v944_v0  ;;  %v1201_v27 = vpack.c.bf16 %v172_v25, %v171_v23  ;;  %v173_v31 = vld [vmem:[%s1698_s1 + $0x1e0] sm:$0xff]  ;;  %v174_v32 = vld [vmem:[%s1698_s1 + $0x1e8] sm:$0xff]  ;;  %v782_v33 = vpack.c.bf16 %v142_v29, %v141_v28  ;;  %v144_v37 = vld [vmem:[%s1698_s1 + $0xf8] sm:$0xff] }
  0x16   :  { %802 = vmatprep.subr.bf16.mxu0 %v944_v0  ;;  %v1218_v34 = vpack.c.bf16 %v174_v32, %v173_v31  ;;  %v175_v38 = vld [vmem:[%s1698_s1 + $0x1f0] sm:$0xff]  ;;  %v176_v39 = vld [vmem:[%s1698_s1 + $0x1f8] sm:$0xff]  ;;  %v177_v42 = vld [vmem:[%s1698_s1 + $0x200] sm:$0xff] }
  0x17   :  { %v1235_v41 = vpack.c.bf16 %v176_v39, %v175_v38  ;;  %v11_v45 = vld [vmem:[%s1699_s0] sm:$0xff]  ;;  %v13_v46 = vld [vmem:[%s1699_s0 + $0x10] sm:$0xff]  ;;  %v18_v48 = vld [vmem:[%s1699_s0 + $0x38] sm:$0xff] }
  0x18   :  { %756 = vmatpush1.bf16.msra.mxu1 %v755_v35  ;;  %v143_v35 = vld [vmem:[%s1698_s1 + $0xf0] sm:$0xff]  ;;  %v180_v52 = vld [vmem:[%s1698_s1 + $0x218] sm:$0xff]  ;;  %v19_v54 = vld [vmem:[%s1699_s0 + $0x40] sm:$0xff] }
  0x19   :  { %804 = vmatpush1.bf16.msra.mxu0 %v1059_v36  ;;  %757 = vmatprep.subr.bf16.mxu1 %v944_v0  ;;  %v785_v40 = vpack.c.bf16 %v144_v37, %v143_v35  ;;  %v179_v51 = vld [vmem:[%s1698_s1 + $0x210] sm:$0xff]  ;;  %v24_v57 = vld [vmem:[%s1699_s0 + $0x68] sm:$0xff]  ;;  %v26_v58 = vld [vmem:[%s1699_s0 + $0x78] sm:$0xff] }
  0x1a   :  { %805 = vmatprep.subr.bf16.mxu0 %v944_v0  ;;  %v17_v53 = vld [vmem:[%s1699_s0 + $0x30] sm:$0xff]  ;;  %v181_v59 = vld [vmem:[%s1698_s1 + $0x220] sm:$0xff]  ;;  %v182_v60 = vld [vmem:[%s1698_s1 + $0x228] sm:$0xff] }
  0x1b   :  { %v842_v63 = vpack.c.bf16 %v182_v60, %v181_v59  ;;  %v30_v1 = vld [vmem:[%s1699_s0 + $0x98] sm:$0xff]  ;;  %v32_v2 = vld [vmem:[%s1699_s0 + $0xa8] sm:$0xff]  ;;  %v183_v3 = vld [vmem:[%s1698_s1 + $0x230] sm:$0xff] }
  0x1c   :  { %759 = vmatpush1.bf16.msra.mxu1 %v758_v43  ;;  %v178_v43 = vld [vmem:[%s1698_s1 + $0x208] sm:$0xff]  ;;  %v31_v6 = vld [vmem:[%s1699_s0 + $0xa0] sm:$0xff]  ;;  %v38_v10 = vld [vmem:[%s1699_s0 + $0xd8] sm:$0xff] }
  0x1d   :  { %807 = vmatpush1.bf16.msra.mxu0 %v1082_v44  ;;  %760 = vmatprep.subr.bf16.mxu1 %v944_v0  ;;  %v836_v47 = vpack.c.bf16 %v178_v43, %v177_v42  ;;  %v36_v9 = vld [vmem:[%s1699_s0 + $0xc8] sm:$0xff]  ;;  %v37_v15 = vld [vmem:[%s1699_s0 + $0xd0] sm:$0xff]  ;;  %v42_v17 = vld [vmem:[%s1699_s0 + $0xf8] sm:$0xff] }
  0x1e   :  { %808 = vmatprep.subr.bf16.mxu0 %v944_v0  ;;  %v186_v14 = vld [vmem:[%s1698_s1 + $0x248] sm:$0xff]  ;;  %v187_v21 = vld [vmem:[%s1698_s1 + $0x250] sm:$0xff]  ;;  %v188_v22 = vld [vmem:[%s1698_s1 + $0x258] sm:$0xff] }
  0x1f   :  { %v43_v23 = vld [vmem:[%s1699_s0 + $0x100] sm:$0xff]  ;;  %v851_v25 = vpack.c.bf16 %v188_v22, %v187_v21  ;;  %v50_v28 = vld [vmem:[%s1699_s0 + $0x138] sm:$0xff]  ;;  %v190_v31 = vld [vmem:[%s1698_s1 + $0x268] sm:$0xff] }
  0x20   :  { %762 = vmatpush1.bf16.msra.mxu1 %v761_v49  ;;  %v20_v49 = vld [vmem:[%s1699_s0 + $0x48] sm:$0xff]  ;;  %v189_v29 = vld [vmem:[%s1698_s1 + $0x260] sm:$0xff]  ;;  %v49_v32 = vld [vmem:[%s1699_s0 + $0x130] sm:$0xff] }
  0x21   :  { %810 = vmatpush1.bf16.msra.mxu0 %v1099_v50  ;;  %763 = vmatprep.subr.bf16.mxu1 %v944_v0  ;;  %v54_v35 = vld [vmem:[%s1699_s0 + $0x158] sm:$0xff]  ;;  %v56_v37 = vld [vmem:[%s1699_s0 + $0x168] sm:$0xff]  ;;  %v191_v38 = vld [vmem:[%s1698_s1 + $0x270] sm:$0xff] }
  0x22   :  { %811 = vmatprep.subr.bf16.mxu0 %v944_v0  ;;  %v192_v39 = vld [vmem:[%s1698_s1 + $0x278] sm:$0xff]  ;;  %v60_v43 = vld [vmem:[%s1699_s0 + $0x188] sm:$0xff]  ;;  %v77_v59 = vld [vmem:[%s1699_s0 + $0x210] sm:$0xff] }
  0x23   :  { %v857_v42 = vpack.c.bf16 %v192_v39, %v191_v38  ;;  %v27_v60 = vld [vmem:[%s1699_s0 + $0x80] sm:$0xff]  ;;  %v69_v21 = vld [vmem:[%s1699_s0 + $0x1d0] sm:$0xff]  ;;  %v80_v22 = vld [vmem:[%s1699_s0 + $0x228] sm:$0xff] }
  0x24   :  { %765 = vmatpush1.bf16.msra.mxu1 %v764_v55  ;;  %v839_v55 = vpack.c.bf16 %v180_v52, %v179_v51  ;;  %v16_v51 = vld [vmem:[%s1699_s0 + $0x28] sm:$0xff]  ;;  %v65_v52 = vld [vmem:[%s1699_s0 + $0x1b0] sm:$0xff]  ;;  %v94_v38 = vld [vmem:[%s1699_s0 + $0x298] sm:$0xff] }
  0x25   :  { %813 = vmatpush1.bf16.msra.mxu0 %v1116_v56  ;;  %766 = vmatprep.subr.bf16.mxu1 %v944_v0  ;;  %v97_v39 = vld [vmem:[%s1699_s0 + $0x2b0] sm:$0xff] }
  0x26   :  { %814 = vmatprep.subr.bf16.mxu0 %v944_v0 }
  0x28   :  { %768 = vmatpush1.bf16.msra.mxu1 %v767_v61  ;;  %v25_v61 = vld [vmem:[%s1699_s0 + $0x70] sm:$0xff] }
  0x29   :  { %816 = vmatpush1.bf16.msra.mxu0 %v1133_v62  ;;  %769 = vmatprep.subr.bf16.mxu1 %v944_v0 }
  0x2a   :  { %817 = vmatprep.subr.bf16.mxu0 %v944_v0 }
  0x2c   :  { %771 = vmatpush1.bf16.msra.mxu1 %v770_v4  ;;  %v184_v4 = vld [vmem:[%s1698_s1 + $0x238] sm:$0xff] }
  0x2d   :  { %819 = vmatpush1.bf16.msra.mxu0 %v1150_v5  ;;  %772 = vmatprep.subr.bf16.mxu1 %v944_v0  ;;  %v845_v7 = vpack.c.bf16 %v184_v4, %v183_v3  ;;  %v39_v3 = vld [vmem:[%s1699_s0 + $0xe0] sm:$0xff]  ;;  %v46_v4 = vld [vmem:[%s1699_s0 + $0x118] sm:$0xff] }
  0x2e   :  { %820 = vmatprep.subr.bf16.mxu0 %v944_v0 }
  0x30   :  { %774 = vmatpush1.bf16.msra.mxu1 %v773_v11  ;;  %v185_v11 = vld [vmem:[%s1698_s1 + $0x240] sm:$0xff] }
  0x31   :  { %822 = vmatpush1.bf16.msra.mxu0 %v1167_v13  ;;  %775 = vmatprep.subr.bf16.mxu1 %v944_v0  ;;  %v848_v16 = vpack.c.bf16 %v186_v14, %v185_v11  ;;  %v58_v11 = vld [vmem:[%s1699_s0 + $0x178] sm:$0xff]  ;;  %v107_v14 = vld [vmem:[%s1699_s0 + $0x300] sm:$0xff] }
  0x32   :  { %823 = vmatprep.subr.bf16.mxu0 %v944_v0 }
  0x34   :  { %777 = vmatpush1.bf16.msra.mxu1 %v776_v19  ;;  %v44_v19 = vld [vmem:[%s1699_s0 + $0x108] sm:$0xff] }
  0x35   :  { %825 = vmatpush1.bf16.msra.mxu0 %v1184_v20  ;;  %778 = vmatprep.subr.bf16.mxu1 %v944_v0 }
  0x36   :  { %826 = vmatprep.subr.bf16.mxu0 %v944_v0 }
  0x38   :  { %780 = vmatpush1.bf16.msra.mxu1 %v779_v26  ;;  %v48_v26 = vld [vmem:[%s1699_s0 + $0x128] sm:$0xff] }
  0x39   :  { %828 = vmatpush1.bf16.msra.mxu0 %v1201_v27  ;;  %781 = vmatprep.subr.bf16.mxu1 %v944_v0 }
  0x3a   :  { %829 = vmatprep.subr.bf16.mxu0 %v944_v0 }
  0x3c   :  { %783 = vmatpush1.bf16.msra.mxu1 %v782_v33  ;;  %v854_v33 = vpack.c.bf16 %v190_v31, %v189_v29  ;;  %v85_v29 = vld [vmem:[%s1699_s0 + $0x250] sm:$0xff] }
  0x3d   :  { %831 = vmatpush1.bf16.msra.mxu0 %v1218_v34  ;;  %784 = vmatprep.subr.bf16.mxu1 %v944_v0  ;;  %v81_v31 = vld [vmem:[%s1699_s0 + $0x230] sm:$0xff] }
  0x3e   :  { %832 = vmatprep.subr.bf16.mxu0 %v944_v0 }
  0x40   :  { %786 = vmatpush1.bf16.msra.mxu1 %v785_v40  ;;  %v55_v40 = vld [vmem:[%s1699_s0 + $0x160] sm:$0xff] }
  0x41   :  { %834 = vmatpush1.bf16.msra.mxu0 %v1235_v41  ;;  %859 = vmatprep.subr.bf16.mxu1 %v944_v0 }
  0x42   :  { %835 = vmatprep.subr.bf16.mxu0 %v944_v0 }
  0x43   :  { %315 = vmatmul.mubr.f32.vlgmr.msra.gmra.mrb[0].mxu1 %v11_v45  ;;  %v62_v45 = vld [vmem:[%s1699_s0 + $0x198] sm:$0xff] }
  0x44   :  { %465 = vmatmul.mubr.f32.vlgmr.msra.gmra.mrb[0].mxu0 %v13_v46  ;;  %319 = vmatprep.mubr.f32.mxu1 %v18_v48  ;;  %v59_v46 = vld [vmem:[%s1699_s0 + $0x180] sm:$0xff]  ;;  %v945_v48 = vmov 0.0  }
  0x45   :  { %837 = vmatpush1.bf16.msra.mxu0 %v836_v47  ;;  %469 = vmatprep.mubr.f32.mxu0 %v20_v49  ;;  %v61_v47 = vld [vmem:[%s1699_s0 + $0x190] sm:$0xff]  ;;  %v193_v49 = vld [vmem:[%s1698_s1 + $0x280] sm:$0x3] }
  0x46   :  { %838 = vmatprep.subr.bf16.mxu0 %v944_v0  ;;  %875 = vmatpush1.bf16.msra.mxu1 %v981_v8  ;;  %v23_v8 = vld [vmem:[%s1699_s0 + $0x60] sm:$0xff] }
  0x47   :  { %320 = vmatmul.mubr.f32.gmra.mrb[2].mxu1 %v17_v53  ;;  %860 = vmatprep.subr.bf16.mxu1 %v944_v0  ;;  %v72_v53 = vld [vmem:[%s1699_s0 + $0x1e8] sm:$0xff] }
  0x48   :  { %470 = vmatmul.mubr.f32.gmra.mrb[2].mxu0 %v19_v54  ;;  %324 = vmatprep.mubr.f32.mxu1 %v24_v57  ;;  %v22_v54 = vld [vmem:[%s1699_s0 + $0x58] sm:$0xff]  ;;  %v21_v57 = vld [vmem:[%s1699_s0 + $0x50] sm:$0xff] }
  0x49   :  { %840 = vmatpush1.bf16.msra.mxu0 %v839_v55  ;;  %474 = vmatprep.mubr.f32.mxu0 %v26_v58  ;;  %v71_v55 = vld [vmem:[%s1699_s0 + $0x1e0] sm:$0xff]  ;;  %v28_v58 = vld [vmem:[%s1699_s0 + $0x88] sm:$0xff] }
  0x4a   :  { %841 = vmatprep.subr.bf16.mxu0 %v944_v0  ;;  %876 = vmatpush1.bf16.msra.mxu1 %v991_v12  ;;  %v29_v12 = vld [vmem:[%s1699_s0 + $0x90] sm:$0xff] }
  0x4b   :  { %325 = vmatmul.mubr.f32.gmra.mrb[4].mxu1 %v23_v8  ;;  %861 = vmatprep.subr.bf16.mxu1 %v944_v0  ;;  %v34_v8 = vld [vmem:[%s1699_s0 + $0xb8] sm:$0xff] }
  0x4c   :  { %475 = vmatmul.mubr.f32.gmra.mrb[4].mxu0 %v25_v61  ;;  %329 = vmatprep.mubr.f32.mxu1 %v30_v1  ;;  %v83_v61 = vld [vmem:[%s1699_s0 + $0x240] sm:$0xff]  ;;  %v40_v1 = vld [vmem:[%s1699_s0 + $0xe8] sm:$0xff] }
  0x4d   :  { %843 = vmatpush1.bf16.msra.mxu0 %v842_v63  ;;  %479 = vmatprep.mubr.f32.mxu0 %v32_v2  ;;  %v33_v63 = vld [vmem:[%s1699_s0 + $0xb0] sm:$0xff] }
  0x4e   :  { %844 = vmatprep.subr.bf16.mxu0 %v944_v0  ;;  %877 = vmatpush1.bf16.msra.mxu1 %v1008_v18  ;;  %v35_v18 = vld [vmem:[%s1699_s0 + $0xc0] sm:$0xff]  ;;  %v89_v2 = vld [vmem:[%s1699_s0 + $0x270] sm:$0xff] }
  0x4f   :  { %330 = vmatmul.mubr.f32.gmra.mrb[6].mxu1 %v29_v12  ;;  %862 = vmatprep.subr.bf16.mxu1 %v944_v0  ;;  %v95_v12 = vld [vmem:[%s1699_s0 + $0x2a0] sm:$0xff] }
  0x50   :  { %480 = vmatmul.mubr.f32.gmra.mrb[6].mxu0 %v31_v6  ;;  %334 = vmatprep.mubr.f32.mxu1 %v36_v9  ;;  %v45_v6 = vld [vmem:[%s1699_s0 + $0x110] sm:$0xff] }
  0x51   :  { %846 = vmatpush1.bf16.msra.mxu0 %v845_v7  ;;  %484 = vmatprep.mubr.f32.mxu0 %v38_v10  ;;  %v52_v7 = vld [vmem:[%s1699_s0 + $0x148] sm:$0xff]  ;;  %v101_v9 = vld [vmem:[%s1699_s0 + $0x2d0] sm:$0xff]  ;;  %v51_v10 = vld [vmem:[%s1699_s0 + $0x140] sm:$0xff] }
  0x52   :  { %847 = vmatprep.subr.bf16.mxu0 %v944_v0  ;;  %878 = vmatpush1.bf16.msra.mxu1 %v1025_v24  ;;  %v41_v24 = vld [vmem:[%s1699_s0 + $0xf0] sm:$0xff] }
  0x53   :  { %335 = vmatmul.mubr.f32.gmra.mrb[8].mxu1 %v35_v18  ;;  %863 = vmatprep.subr.bf16.mxu1 %v944_v0  ;;  %v57_v18 = vld [vmem:[%s1699_s0 + $0x170] sm:$0xff] }
  0x54   :  { %485 = vmatmul.mubr.f32.gmra.mrb[8].mxu0 %v37_v15  ;;  %339 = vmatprep.mubr.f32.mxu1 %v42_v17  ;;  %v67_v15 = vld [vmem:[%s1699_s0 + $0x1c0] sm:$0xff]  ;;  %v70_v17 = vld [vmem:[%s1699_s0 + $0x1d8] sm:$0xff] }
  0x55   :  { %849 = vmatpush1.bf16.msra.mxu0 %v848_v16  ;;  %489 = vmatprep.mubr.f32.mxu0 %v44_v19  ;;  %v63_v16 = vld [vmem:[%s1699_s0 + $0x1a0] sm:$0xff]  ;;  %v73_v19 = vld [vmem:[%s1699_s0 + $0x1f0] sm:$0xff] }
  0x56   :  { %850 = vmatprep.subr.bf16.mxu0 %v944_v0  ;;  %879 = vmatpush1.bf16.msra.mxu1 %v1042_v30  ;;  %v47_v30 = vld [vmem:[%s1699_s0 + $0x120] sm:$0xff] }
  0x57   :  { %340 = vmatmul.mubr.f32.gmra.mrb[10].mxu1 %v41_v24  ;;  %864 = vmatprep.subr.bf16.mxu1 %v944_v0  ;;  %v76_v24 = vld [vmem:[%s1699_s0 + $0x208] sm:$0xff] }
  0x58   :  { %490 = vmatmul.mubr.f32.gmra.mrb[10].mxu0 %v43_v23  ;;  %344 = vmatprep.mubr.f32.mxu1 %v48_v26  ;;  %v79_v23 = vld [vmem:[%s1699_s0 + $0x220] sm:$0xff]  ;;  %v86_v26 = vld [vmem:[%s1699_s0 + $0x258] sm:$0xff] }
  0x59   :  { %852 = vmatpush1.bf16.msra.mxu0 %v851_v25  ;;  %494 = vmatprep.mubr.f32.mxu0 %v50_v28  ;;  %v75_v25 = vld [vmem:[%s1699_s0 + $0x200] sm:$0xff]  ;;  %v82_v28 = vld [vmem:[%s1699_s0 + $0x238] sm:$0xff] }
  0x5a   :  { %853 = vmatprep.subr.bf16.mxu0 %v944_v0  ;;  %880 = vmatpush1.bf16.msra.mxu1 %v1059_v36  ;;  %v53_v36 = vld [vmem:[%s1699_s0 + $0x150] sm:$0xff] }
  0x5b   :  { %345 = vmatmul.mubr.f32.gmra.mrb[12].mxu1 %v47_v30  ;;  %865 = vmatprep.subr.bf16.mxu1 %v944_v0  ;;  %v92_v30 = vld [vmem:[%s1699_s0 + $0x288] sm:$0xff] }
  0x5c   :  { %495 = vmatmul.mubr.f32.gmra.mrb[12].mxu0 %v49_v32  ;;  %349 = vmatprep.mubr.f32.mxu1 %v54_v35  ;;  %v88_v32 = vld [vmem:[%s1699_s0 + $0x268] sm:$0xff]  ;;  %v87_v35 = vld [vmem:[%s1699_s0 + $0x260] sm:$0xff] }
  0x5d   :  { %855 = vmatpush1.bf16.msra.mxu0 %v854_v33  ;;  %499 = vmatprep.mubr.f32.mxu0 %v56_v37  ;;  %v91_v33 = vld [vmem:[%s1699_s0 + $0x280] sm:$0xff]  ;;  %v98_v37 = vld [vmem:[%s1699_s0 + $0x2b8] sm:$0xff] }
  0x5e   :  { %856 = vmatprep.subr.bf16.mxu0 %v944_v0  ;;  %881 = vmatpush1.bf16.msra.mxu1 %v1082_v44  ;;  %v66_v44 = vld [vmem:[%s1699_s0 + $0x1b8] sm:$0xff] }
  0x5f   :  { %350 = vmatmul.mubr.f32.gmra.mrb[14].mxu1 %v53_v36  ;;  %866 = vmatprep.subr.bf16.mxu1 %v944_v0  ;;  %v93_v36 = vld [vmem:[%s1699_s0 + $0x290] sm:$0xff] }
  0x60   :  { %500 = vmatmul.mubr.f32.gmra.mrb[14].mxu0 %v55_v40  ;;  %354 = vmatprep.mubr.f32.mxu1 %v60_v43  ;;  %v104_v40 = vld [vmem:[%s1699_s0 + $0x2e8] sm:$0xff]  ;;  %v103_v43 = vld [vmem:[%s1699_s0 + $0x2e0] sm:$0xff] }
  0x61   :  { %858 = vmatpush1.bf16.msra.mxu0 %v857_v42  ;;  %504 = vmatprep.mubr.f32.mxu0 %v62_v45  ;;  %v100_v42 = vld [vmem:[%s1699_s0 + $0x2c8] sm:$0xff]  ;;  %v99_v45 = vld [vmem:[%s1699_s0 + $0x2c0] sm:$0xff] }
  0x62   :  { %582 = vmatprep.subr.mxu0 %v945_v48  ;;  %882 = vmatpush1.bf16.msra.mxu1 %v1099_v50  ;;  %v15_v50 = vld [vmem:[%s1699_s0 + $0x20] sm:$0xff]  ;;  %v105_v48 = vld [vmem:[%s1699_s0 + $0x2f0] sm:$0xff] }
  0x63   :  { %355 = vmatmul.mubr.f32.gmra.mrb[16].mxu1 %v59_v46  ;;  %867 = vmatprep.subr.bf16.mxu1 %v944_v0  ;;  %v110_v46 = vld [vmem:[%s1699_s0 + $0x318] sm:$0xff] }
  0x64   :  { %505 = vmatmul.mubr.f32.gmra.mrb[16].mxu0 %v61_v47  ;;  %359 = vmatprep.mubr.f32.mxu1 %v66_v44  ;;  %v106_v47 = vld [vmem:[%s1699_s0 + $0x2f8] sm:$0xff]  ;;  %v109_v44 = vld [vmem:[%s1699_s0 + $0x310] sm:$0xff] }
  0x65   :  { %721 = vmatpush1.msk.msra.mxu0 %vm246_vm0, %v193_v49  ;;  %722 = vmatprep.mubr.msk.f32.mxu0 %vm194_vm1, %v16_v51  ;;  %v112_v49 = vld [vmem:[%s1699_s0 + $0x328] sm:$0xff]  ;;  %v111_v51 = vld [vmem:[%s1699_s0 + $0x320] sm:$0xff] }
  0x66   :  { %883 = vmatpush1.bf16.msra.mxu1 %v1116_v56  ;;  %v78_v56 = vld [vmem:[%s1699_s0 + $0x218] sm:$0xff] }
  0x67   :  { %360 = vmatmul.mubr.f32.gmra.mrb[18].mxu1 %v65_v52  ;;  %868 = vmatprep.subr.bf16.mxu1 %v944_v0 }
  0x68   :  { %615 = vmatmul.mubr.f32.vlgmr.msra.gmra.mrb[0].mxu0 %v15_v50  ;;  %364 = vmatprep.mubr.f32.mxu1 %v72_v53 }
  0x69   :  { %723 = vmatprep.mubr.msk.f32.mxu0 %vm194_vm1, %v22_v54 }
  0x6a   :  { %884 = vmatpush1.bf16.msra.mxu1 %v1133_v62  ;;  %v84_v62 = vld [vmem:[%s1699_s0 + $0x248] sm:$0xff] }
  0x6b   :  { %365 = vmatmul.mubr.f32.gmra.mrb[20].mxu1 %v71_v55  ;;  %869 = vmatprep.subr.bf16.mxu1 %v944_v0 }
  0x6c   :  { %620 = vmatmul.mubr.f32.gmra.mrb[2].mxu0 %v21_v57  ;;  %369 = vmatprep.mubr.f32.mxu1 %v78_v56 }
  0x6d   :  { %724 = vmatprep.mubr.msk.f32.mxu0 %vm194_vm1, %v28_v58 }
  0x6e   :  { %885 = vmatpush1.bf16.msra.mxu1 %v1150_v5  ;;  %v90_v5 = vld [vmem:[%s1699_s0 + $0x278] sm:$0xff] }
  0x6f   :  { %370 = vmatmul.mubr.f32.gmra.mrb[22].mxu1 %v77_v59  ;;  %870 = vmatprep.subr.bf16.mxu1 %v944_v0 }
  0x70   :  { %625 = vmatmul.mubr.f32.gmra.mrb[4].mxu0 %v27_v60  ;;  %374 = vmatprep.mubr.f32.mxu1 %v84_v62 }
  0x71   :  { %725 = vmatprep.mubr.msk.f32.mxu0 %vm194_vm1, %v34_v8 }
  0x72   :  { %886 = vmatpush1.bf16.msra.mxu1 %v1167_v13  ;;  %v96_v13 = vld [vmem:[%s1699_s0 + $0x2a8] sm:$0xff] }
  0x73   :  { %375 = vmatmul.mubr.f32.gmra.mrb[24].mxu1 %v83_v61  ;;  %871 = vmatprep.subr.bf16.mxu1 %v944_v0 }
  0x74   :  { %630 = vmatmul.mubr.f32.gmra.mrb[6].mxu0 %v33_v63  ;;  %379 = vmatprep.mubr.f32.mxu1 %v90_v5 }
  0x75   :  { %726 = vmatprep.mubr.msk.f32.mxu0 %vm194_vm1, %v40_v1 }
  0x76   :  { %887 = vmatpush1.bf16.msra.mxu1 %v1184_v20  ;;  %v102_v20 = vld [vmem:[%s1699_s0 + $0x2d8] sm:$0xff] }
  0x77   :  { %380 = vmatmul.mubr.f32.gmra.mrb[26].mxu1 %v89_v2  ;;  %872 = vmatprep.subr.bf16.mxu1 %v944_v0 }
  0x78   :  { %635 = vmatmul.mubr.f32.gmra.mrb[8].mxu0 %v39_v3  ;;  %384 = vmatprep.mubr.f32.mxu1 %v96_v13 }
  0x79   :  { %727 = vmatprep.mubr.msk.f32.mxu0 %vm194_vm1, %v46_v4 }
  0x7a   :  { %888 = vmatpush1.bf16.msra.mxu1 %v1201_v27  ;;  %v108_v27 = vld [vmem:[%s1699_s0 + $0x308] sm:$0xff] }
  0x7b   :  { %385 = vmatmul.mubr.f32.gmra.mrb[28].mxu1 %v95_v12  ;;  %873 = vmatprep.subr.bf16.mxu1 %v944_v0 }
  0x7c   :  { %640 = vmatmul.mubr.f32.gmra.mrb[10].mxu0 %v45_v6  ;;  %389 = vmatprep.mubr.f32.mxu1 %v102_v20 }
  0x7d   :  { %728 = vmatprep.mubr.msk.f32.mxu0 %vm194_vm1, %v52_v7 }
  0x7e   :  { %889 = vmatpush1.bf16.msra.mxu1 %v1218_v34  ;;  %v68_v34 = vld [vmem:[%s1699_s0 + $0x1c8] sm:$0xff] }
  0x7f   :  { %390 = vmatmul.mubr.f32.gmra.mrb[30].mxu1 %v101_v9  ;;  %874 = vmatprep.subr.bf16.mxu1 %v944_v0  ;;  %v64_v0 = vld [vmem:[%s1699_s0 + $0x1a8] sm:$0xff] }
  0x80   :  { %645 = vmatmul.mubr.f32.gmra.mrb[12].mxu0 %v51_v10  ;;  %394 = vmatprep.mubr.f32.mxu1 %v108_v27 }
  0x81   :  { %729 = vmatprep.mubr.msk.f32.mxu0 %vm194_vm1, %v58_v11 }
  0x82   :  { %890 = vmatpush1.bf16.msra.mxu1 %v1235_v41  ;;  %v74_v41 = vld [vmem:[%s1699_s0 + $0x1f8] sm:$0xff] }
  0x83   :  { %395 = vmatmul.mubr.f32.gmra.mrb[32].mxu1 %v107_v14 }
  0x84   :  { %650 = vmatmul.mubr.f32.gmra.mrb[14].mxu0 %v57_v18  ;;  %509 = vmatprep.mubr.f32.mxu1 %v68_v34 }
  0x85   :  { %730 = vmatprep.mubr.msk.f32.mxu0 %vm194_vm1, %v64_v0 }
  0x87   :  { %510 = vmatmul.mubr.f32.vlgmr.msra.gmra.mrb[18].mxu1 %v67_v15 }
  0x88   :  { %655 = vmatmul.mubr.f32.gmra.mrb[16].mxu0 %v63_v16  ;;  %514 = vmatprep.mubr.f32.mxu1 %v74_v41 }
  0x89   :  { %731 = vmatprep.mubr.msk.f32.mxu0 %vm194_vm1, %v70_v17 }
  0x8b   :  { %515 = vmatmul.mubr.f32.gmra.mrb[20].mxu1 %v73_v19 }
  0x8c   :  { %660 = vmatmul.mubr.f32.gmra.mrb[18].mxu0 %v69_v21  ;;  %519 = vmatprep.mubr.f32.mxu1 %v80_v22 }
  0x8d   :  { %732 = vmatprep.mubr.msk.f32.mxu0 %vm194_vm1, %v76_v24 }
  0x8f   :  { %520 = vmatmul.mubr.f32.gmra.mrb[22].mxu1 %v79_v23 }
  0x90   :  { %665 = vmatmul.mubr.f32.gmra.mrb[20].mxu0 %v75_v25  ;;  %524 = vmatprep.mubr.f32.mxu1 %v86_v26 }
  0x91   :  { %733 = vmatprep.mubr.msk.f32.mxu0 %vm194_vm1, %v82_v28 }
  0x93   :  { %525 = vmatmul.mubr.f32.gmra.mrb[24].mxu1 %v85_v29 }
  0x94   :  { %670 = vmatmul.mubr.f32.gmra.mrb[22].mxu0 %v81_v31  ;;  %529 = vmatprep.mubr.f32.mxu1 %v92_v30 }
  0x95   :  { %734 = vmatprep.mubr.msk.f32.mxu0 %vm194_vm1, %v88_v32 }
  0x97   :  { %530 = vmatmul.mubr.f32.gmra.mrb[26].mxu1 %v91_v33 }
  0x98   :  { %675 = vmatmul.mubr.f32.gmra.mrb[24].mxu0 %v87_v35  ;;  %534 = vmatprep.mubr.f32.mxu1 %v98_v37 }
  0x99   :  { %735 = vmatprep.mubr.msk.f32.mxu0 %vm194_vm1, %v94_v38 }
  0x9b   :  { %535 = vmatmul.mubr.f32.gmra.mrb[28].mxu1 %v97_v39 }
  0x9c   :  { %680 = vmatmul.mubr.f32.gmra.mrb[26].mxu0 %v93_v36  ;;  %539 = vmatprep.mubr.f32.mxu1 %v104_v40 }
  0x9d   :  { %736 = vmatprep.mubr.msk.f32.mxu0 %vm194_vm1, %v100_v42 }
  0x9f   :  { %540 = vmatmul.mubr.f32.gmra.mrb[30].mxu1 %v103_v43 }
  0xa0   :  { %685 = vmatmul.mubr.f32.gmra.mrb[28].mxu0 %v99_v45  ;;  %544 = vmatprep.mubr.f32.mxu1 %v110_v46 }
  0xa1   :  { %737 = vmatprep.mubr.msk.f32.mxu0 %vm194_vm1, %v106_v47 }
  0xa3   :  { %545 = vmatmul.mubr.f32.gmra.mrb[32].mxu1 %v109_v44 }
  0xa4   :  { %690 = vmatmul.mubr.f32.gmra.mrb[30].mxu0 %v105_v48 }
  0xa5   :  { %738 = vmatprep.mubr.msk.f32.mxu0 %vm194_vm1, %v112_v49 }
  0xa8   :  { %695 = vmatmul.mubr.f32.gmra.mrb[32].mxu0 %v111_v51 }
 0x116   :  { %v316_v52 = vpop.f32.mrb[0].mxu1 }
 0x117   :  { %v318_v50 = vpop.f32.mrb[1].mxu1 }
 0x11a   :  { %v321_v53 = vpop.f32.mrb[2].mxu1 }
 0x11b   :  { %v323_v54 = vpop.f32.mrb[3].mxu1 }
 0x11e   :  { %v326_v55 = vpop.f32.mrb[4].mxu1 }
 0x11f   :  { %v328_v57 = vpop.f32.mrb[5].mxu1 }
 0x122   :  { %v331_v56 = vpop.f32.mrb[6].mxu1 }
 0x123   :  { %v333_v58 = vpop.f32.mrb[7].mxu1 }
 0x126   :  { %v336_v59 = vpop.f32.mrb[8].mxu1 }
 0x127   :  { %v338_v60 = vpop.f32.mrb[9].mxu1 }
 0x12a   :  { %v341_v62 = vpop.f32.mrb[10].mxu1 }
 0x12b   :  { %v343_v8 = vpop.f32.mrb[11].mxu1 }
 0x12e   :  { %v346_v61 = vpop.f32.mrb[12].mxu1 }
 0x12f   :  { %v348_v63 = vpop.f32.mrb[13].mxu1 }
 0x132   :  { %v351_v5 = vpop.f32.mrb[14].mxu1 }
 0x133   :  { %v353_v1 = vpop.f32.mrb[15].mxu1 }
 0x136   :  { %v356_v2 = vpop.f32.mrb[16].mxu1 }
 0x137   :  { %v358_v3 = vpop.f32.mrb[17].mxu1 }
 0x13b   :  { %v616_v13 = vpop.f32.mrb[0].mxu0 }
 0x13c   :  { %v891_v4 = vadd.f32 %v616_v13, %v316_v52  ;;  %v618_v12 = vpop.f32.mrb[1].mxu0 }
 0x13e   :  { %700 = vst [vmem:[%s1700_s2] sm:$0xff] %v891_v4 }
 0x13f   :  { %v621_v6 = vpop.f32.mrb[2].mxu0 }
 0x140   :  { %v892_v20 = vadd.f32 %v621_v6, %v321_v53  ;;  %v623_v7 = vpop.f32.mrb[3].mxu0 }
 0x142   :  { %701 = vst [vmem:[%s1700_s2 + $0x8] sm:$0xff] %v892_v20 }
 0x143   :  { %v626_v9 = vpop.f32.mrb[4].mxu0 }
 0x144   :  { %v893_v10 = vadd.f32 %v626_v9, %v326_v55  ;;  %v628_v27 = vpop.f32.mrb[5].mxu0 }
 0x146   :  { %702 = vst [vmem:[%s1700_s2 + $0x10] sm:$0xff] %v893_v10 }
 0x147   :  { %v631_v11 = vpop.f32.mrb[6].mxu0 }
 0x148   :  { %v894_v14 = vadd.f32 %v631_v11, %v331_v56  ;;  %v633_v18 = vpop.f32.mrb[7].mxu0 }
 0x14a   :  { %703 = vst [vmem:[%s1700_s2 + $0x18] sm:$0xff] %v894_v14 }
 0x14b   :  { %v636_v34 = vpop.f32.mrb[8].mxu0 }
 0x14c   :  { %v895_v0 = vadd.f32 %v636_v34, %v336_v59  ;;  %v638_v15 = vpop.f32.mrb[9].mxu0 }
 0x14e   :  { %704 = vst [vmem:[%s1700_s2 + $0x20] sm:$0xff] %v895_v0 }
 0x14f   :  { %v641_v16 = vpop.f32.mrb[10].mxu0 }
 0x150   :  { %v896_v41 = vadd.f32 %v641_v16, %v341_v62  ;;  %v643_v17 = vpop.f32.mrb[11].mxu0 }
 0x152   :  { %705 = vst [vmem:[%s1700_s2 + $0x28] sm:$0xff] %v896_v41 }
 0x153   :  { %v646_v19 = vpop.f32.mrb[12].mxu0 }
 0x154   :  { %v897_v21 = vadd.f32 %v646_v19, %v346_v61  ;;  %v648_v22 = vpop.f32.mrb[13].mxu0 }
 0x156   :  { %706 = vst [vmem:[%s1700_s2 + $0x30] sm:$0xff] %v897_v21 }
 0x157   :  { %v651_v24 = vpop.f32.mrb[14].mxu0 }
 0x158   :  { %v898_v23 = vadd.f32 %v651_v24, %v351_v5  ;;  %v653_v25 = vpop.f32.mrb[15].mxu0 }
 0x15a   :  { %707 = vst [vmem:[%s1700_s2 + $0x38] sm:$0xff] %v898_v23  ;;  %v511_v26 = vpop.f32.mrb[18].mxu1 }
 0x15b   :  { %v656_v28 = vpop.f32.mrb[16].mxu0  ;;  %v513_v29 = vpop.f32.mrb[19].mxu1 }
 0x15c   :  { %v899_v31 = vadd.f32 %v656_v28, %v356_v2  ;;  %v658_v30 = vpop.f32.mrb[17].mxu0 }
 0x15e   :  { %708 = vst [vmem:[%s1700_s2 + $0x40] sm:$0xff] %v899_v31  ;;  %v516_v32 = vpop.f32.mrb[20].mxu1 }
 0x15f   :  { %v661_v33 = vpop.f32.mrb[18].mxu0  ;;  %v518_v35 = vpop.f32.mrb[21].mxu1 }
 0x160   :  { %v900_v37 = vadd.f32 %v661_v33, %v511_v26  ;;  %v663_v38 = vpop.f32.mrb[19].mxu0 }
 0x162   :  { %709 = vst [vmem:[%s1700_s2 + $0x48] sm:$0xff] %v900_v37  ;;  %v521_v39 = vpop.f32.mrb[22].mxu1 }
 0x163   :  { %v666_v36 = vpop.f32.mrb[20].mxu0  ;;  %v523_v40 = vpop.f32.mrb[23].mxu1 }
 0x164   :  { %v901_v42 = vadd.f32 %v666_v36, %v516_v32  ;;  %v668_v43 = vpop.f32.mrb[21].mxu0 }
 0x166   :  { %710 = vst [vmem:[%s1700_s2 + $0x50] sm:$0xff] %v901_v42  ;;  %v526_v45 = vpop.f32.mrb[24].mxu1 }
 0x167   :  { %v671_v46 = vpop.f32.mrb[22].mxu0  ;;  %v528_v47 = vpop.f32.mrb[25].mxu1 }
 0x168   :  { %v902_v44 = vadd.f32 %v671_v46, %v521_v39  ;;  %v673_v48 = vpop.f32.mrb[23].mxu0 }
 0x16a   :  { %711 = vst [vmem:[%s1700_s2 + $0x58] sm:$0xff] %v902_v44  ;;  %v531_v49 = vpop.f32.mrb[26].mxu1 }
 0x16b   :  { %v676_v51 = vpop.f32.mrb[24].mxu0  ;;  %v533_v52 = vpop.f32.mrb[27].mxu1 }
 0x16c   :  { %v903_v50 = vadd.f32 %v676_v51, %v526_v45  ;;  %v678_v53 = vpop.f32.mrb[25].mxu0 }
 0x16e   :  { %712 = vst [vmem:[%s1700_s2 + $0x60] sm:$0xff] %v903_v50  ;;  %v536_v54 = vpop.f32.mrb[28].mxu1 }
 0x16f   :  { %v681_v55 = vpop.f32.mrb[26].mxu0  ;;  %v538_v57 = vpop.f32.mrb[29].mxu1 }
 0x170   :  { %v904_v56 = vadd.f32 %v681_v55, %v531_v49  ;;  %v683_v58 = vpop.f32.mrb[27].mxu0 }
 0x172   :  { %713 = vst [vmem:[%s1700_s2 + $0x68] sm:$0xff] %v904_v56  ;;  %v541_v59 = vpop.f32.mrb[30].mxu1 }
 0x173   :  { %v686_v60 = vpop.f32.mrb[28].mxu0  ;;  %v543_v62 = vpop.f32.mrb[31].mxu1 }
 0x174   :  { %v905_v8 = vadd.f32 %v686_v60, %v536_v54  ;;  %v688_v61 = vpop.f32.mrb[29].mxu0 }
 0x176   :  { %714 = vst [vmem:[%s1700_s2 + $0x70] sm:$0xff] %v905_v8  ;;  %v546_v63 = vpop.f32.mrb[32].mxu1 }
 0x177   :  { %v691_v5 = vpop.f32.mrb[30].mxu0  ;;  %v548_v1 = vpop.f32.mrb[33].mxu1 }
 0x178   :  { %v906_v2 = vadd.f32 %v691_v5, %v541_v59  ;;  %v693_v3 = vpop.f32.mrb[31].mxu0 }
 0x17a   :  { %715 = vst [vmem:[%s1700_s2 + $0x78] sm:$0xff] %v906_v2 }
 0x17b   :  { %v696_v13 = vpop.f32.mrb[32].mxu0 }
 0x17c   :  { %v907_v4 = vadd.f32 %v696_v13, %v546_v63  ;;  %v698_v12 = vpop.f32.mrb[33].mxu0 }
 0x17e   :  { %716 = vst [vmem:[%s1700_s2 + $0x80] sm:$0xff] %v907_v4 }

</bundles_post_ra>
